<compile_context>
chip_gen: v7x
topology: tpu7x:2x2x1
jax: 0.10.0
libtpu: 0.0.40
codegen_flags: <defaults>
</compile_context>

<pallas_src>
import jax
import jax.numpy as jnp
from jax.experimental import pallas as pl
from jax.experimental.pallas import tpu as pltpu


def occupancy_mlp_kernel(x_ref, w1_ref, b1_ref, w2_ref, b2_ref, o_ref):
    # x_ref:  [TILE_B, D]      (batch tile, features on lanes)
    # w1_ref: [D, 32]          (resident across grid steps)
    # b1_ref: [1, 32]
    # w2_ref: [32, C_PAD]      (class dim zero-padded to 128 for the MXU)
    # b2_ref: [1, C_PAD]
    # o_ref:  [TILE_B, C]      (natural-width output -> minimal HBM writeback)
    x = x_ref[...]
    h = jnp.dot(x, w1_ref[...], preferred_element_type=jnp.float32)
    h = jnp.maximum(h + b1_ref[...], 0.0)                        # ReLU
    o = jnp.dot(h, w2_ref[...], preferred_element_type=jnp.float32) + b2_ref[...]
    c = o_ref.shape[1]
    o_ref[...] = o[:, :c].astype(o_ref.dtype)


def occupancy_classifier_forward(x, w1, b1, w2, b2, *, tile_b=512):
    """x: [B, D] f32; w1: [D, 32]; b1: [1, 32]; w2: [32, C]; b2: [1, C]."""
    B, D = x.shape
    H, C = w2.shape

    # ---- pad the class dim of the weights to 128 for a lane-dense matmul ----
    C_pad = max(128, ((C + 127) // 128) * 128)
    w2p = jnp.pad(w2.astype(jnp.float32), ((0, 0), (0, C_pad - C)))
    b2p = jnp.pad(b2.astype(jnp.float32), ((0, 0), (0, C_pad - C)))

    # ---- batch tiling: TILE_B multiple of 8, pad B up to a tile multiple ----
    if B >= tile_b:
        TILE_B = tile_b
    else:
        TILE_B = max(8, ((B + 7) // 8) * 8)
    n_tiles = pl.cdiv(B, TILE_B)
    B_pad = n_tiles * TILE_B
    if B_pad != B:
        x = jnp.pad(x, ((0, B_pad - B), (0, 0)))

    out = pl.pallas_call(
        occupancy_mlp_kernel,
        out_shape=jax.ShapeDtypeStruct((B_pad, C), jnp.float32),
        grid_spec=pltpu.PrefetchScalarGridSpec(
            num_scalar_prefetch=0,
            grid=(n_tiles,),
            in_specs=[
                pl.BlockSpec((TILE_B, D), lambda i: (i, 0)),   # x: tiled on batch
                pl.BlockSpec((D, H), lambda i: (0, 0)),        # w1: resident
                pl.BlockSpec((1, H), lambda i: (0, 0)),        # b1: resident
                pl.BlockSpec((H, C_pad), lambda i: (0, 0)),    # w2 (padded): resident
                pl.BlockSpec((1, C_pad), lambda i: (0, 0)),    # b2 (padded): resident
            ],
            out_specs=pl.BlockSpec((TILE_B, C), lambda i: (i, 0)),
        ),
        compiler_params=pltpu.CompilerParams(
            dimension_semantics=("parallel",)),
    )(x, w1, b1, w2p, b2p)

    # Strip batch padding (no column slice needed: output already width C).
    return out[:B] if B_pad != B else out


def init_params(key, data_length, num_classes, hidden=32):
    # Deterministic init mimicking nn.Linear's uniform(-1/sqrt(fan_in), +1/sqrt(fan_in)).
    k1, k2, k3, k4 = jax.random.split(key, 4)
    lim1 = 1.0 / jnp.sqrt(jnp.float32(data_length))
    lim2 = 1.0 / jnp.sqrt(jnp.float32(hidden))
    w1 = jax.random.uniform(k1, (data_length, hidden), jnp.float32, -lim1, lim1)
    b1 = jax.random.uniform(k2, (1, hidden), jnp.float32, -lim1, lim1)
    w2 = jax.random.uniform(k3, (hidden, num_classes), jnp.float32, -lim2, lim2)
    b2 = jax.random.uniform(k4, (1, num_classes), jnp.float32, -lim2, lim2)
    return w1, b1, w2, b2


def _ref_forward(x, w1, b1, w2, b2):
    return jnp.maximum(x @ w1 + b1, 0.0) @ w2 + b2


if __name__ == "__main__":
    data_length = 16
    num_classes = 4

    key = jax.random.PRNGKey(0)
    kx, kp, kx2 = jax.random.split(key, 3)
    w1, b1, w2, b2 = init_params(kp, data_length, num_classes)

    # Small-shape check (matches the module's toy sizes).
    batch = 8
    x = jax.random.normal(kx, (batch, data_length), jnp.float32)
    out = jax.block_until_ready(occupancy_classifier_forward(x, w1, b1, w2, b2))
    assert out.shape == (batch, num_classes)
    assert jnp.allclose(out, _ref_forward(x, w1, b1, w2, b2), atol=1e-5, rtol=1e-5)

    # Larger batch exercises the batch grid / resident weights / narrow output DMA,
    # including a non-multiple-of-tile batch (partial-tile padding path).
    big_batch = 1000
    xb = jax.random.normal(kx2, (big_batch, data_length), jnp.float32)
    outb = jax.block_until_ready(occupancy_classifier_forward(xb, w1, b1, w2, b2))
    assert outb.shape == (big_batch, num_classes)
    assert jnp.allclose(outb, _ref_forward(xb, w1, b1, w2, b2), atol=1e-5, rtol=1e-5)

    print("KERNEL_OK")
</pallas_src>

<mosaic_0001>
module attributes {stable_mosaic.version = 11 : i64} {
  func.func @occupancy_mlp_kernel(%arg0: i32, %arg1: memref<8x16xf32, #tpu.memory_space<vmem>>, %arg2: memref<16x32xf32, #tpu.memory_space<vmem>>, %arg3: memref<1x32xf32, #tpu.memory_space<vmem>>, %arg4: memref<32x128xf32, #tpu.memory_space<vmem>>, %arg5: memref<1x128xf32, #tpu.memory_space<vmem>>, %arg6: memref<8x4xf32, #tpu.memory_space<vmem>>) attributes {dimension_semantics = [#tpu.dimension_semantics<parallel>], iteration_bounds = array<i64: 1>, scalar_prefetch = 0 : i64, scratch_operands = 0 : i64, tpu.core_type = #tpu.core_type<tc>, window_params = [{transform_indices = @transform_0, window_bounds = array<i64: 8, 16>}, {pipeline_mode = #tpu.pipeline_mode<synchronous>, transform_indices = @transform_1, window_bounds = array<i64: 16, 32>}, {pipeline_mode = #tpu.pipeline_mode<synchronous>, transform_indices = @transform_2, window_bounds = array<i64: 1, 32>}, {pipeline_mode = #tpu.pipeline_mode<synchronous>, transform_indices = @transform_3, window_bounds = array<i64: 32, 128>}, {pipeline_mode = #tpu.pipeline_mode<synchronous>, transform_indices = @transform_4, window_bounds = array<i64: 1, 128>}, {transform_indices = @transform_5, window_bounds = array<i64: 8, 4>}]} {
    %c0 = arith.constant 0 : index
    %c0_0 = arith.constant 0 : index
    %0 = vector.load %arg1[%c0, %c0_0] : memref<8x16xf32, #tpu.memory_space<vmem>>, vector<8x16xf32>
    %c0_1 = arith.constant 0 : index
    %c0_2 = arith.constant 0 : index
    %1 = vector.load %arg2[%c0_1, %c0_2] : memref<16x32xf32, #tpu.memory_space<vmem>>, vector<16x32xf32>
    %cst = arith.constant dense<0.000000e+00> : vector<8x32xf32>
    %2 = tpu.matmul %0, %1, %cst {dimension_numbers = #tpu.dot_dimension_numbers<[1], [0], [0], [1], [0, 0, 1, 1], [], []>} : vector<8x16xf32>, vector<16x32xf32>, vector<8x32xf32> -> vector<8x32xf32>
    %c0_3 = arith.constant 0 : index
    %c0_4 = arith.constant 0 : index
    %3 = vector.load %arg3[%c0_3, %c0_4] : memref<1x32xf32, #tpu.memory_space<vmem>>, vector<1x32xf32>
    %4 = vector.broadcast %3 : vector<1x32xf32> to vector<8x32xf32>
    %5 = arith.addf %2, %4 : vector<8x32xf32>
    %cst_5 = arith.constant 0.000000e+00 : f32
    %6 = vector.broadcast %cst_5 : f32 to vector<8x32xf32>
    %7 = arith.maximumf %5, %6 : vector<8x32xf32>
    %c0_6 = arith.constant 0 : index
    %c0_7 = arith.constant 0 : index
    %8 = vector.load %arg4[%c0_6, %c0_7] : memref<32x128xf32, #tpu.memory_space<vmem>>, vector<32x128xf32>
    %cst_8 = arith.constant dense<0.000000e+00> : vector<8x128xf32>
    %9 = tpu.matmul %7, %8, %cst_8 {dimension_numbers = #tpu.dot_dimension_numbers<[1], [0], [0], [1], [0, 0, 1, 1], [], []>} : vector<8x32xf32>, vector<32x128xf32>, vector<8x128xf32> -> vector<8x128xf32>
    %c0_9 = arith.constant 0 : index
    %c0_10 = arith.constant 0 : index
    %10 = vector.load %arg5[%c0_9, %c0_10] : memref<1x128xf32, #tpu.memory_space<vmem>>, vector<1x128xf32>
    %11 = vector.broadcast %10 : vector<1x128xf32> to vector<8x128xf32>
    %12 = arith.addf %9, %11 : vector<8x128xf32>
    %13 = vector.extract_strided_slice %12 {offsets = [0, 0], sizes = [8, 4], strides = [1, 1]} : vector<8x128xf32> to vector<8x4xf32>
    %c0_11 = arith.constant 0 : index
    %c0_12 = arith.constant 0 : index
    %14 = vector.load %arg6[%c0_11, %c0_12] : memref<8x4xf32, #tpu.memory_space<vmem>>, vector<8x4xf32>
    tpu.vector_store %arg6[%c0_11, %c0_12], %13 {strides = array<i32>} : memref<8x4xf32, #tpu.memory_space<vmem>>, vector<8x4xf32>,
    return
  }
  func.func @transform_0(%arg0: i32) -> (i32, i32) {
    %c0_i32 = arith.constant 0 : i32
    %c0_i32_0 = arith.constant 0 : i32
    return %arg0, %c0_i32 : i32, i32
  }
  func.func @transform_1(%arg0: i32) -> (i32, i32) {
    %c0_i32 = arith.constant 0 : i32
    %c0_i32_0 = arith.constant 0 : i32
    %c0_i32_1 = arith.constant 0 : i32
    return %c0_i32, %c0_i32_0 : i32, i32
  }
  func.func @transform_2(%arg0: i32) -> (i32, i32) {
    %c0_i32 = arith.constant 0 : i32
    %c0_i32_0 = arith.constant 0 : i32
    %c0_i32_1 = arith.constant 0 : i32
    return %c0_i32, %c0_i32_0 : i32, i32
  }
  func.func @transform_3(%arg0: i32) -> (i32, i32) {
    %c0_i32 = arith.constant 0 : i32
    %c0_i32_0 = arith.constant 0 : i32
    %c0_i32_1 = arith.constant 0 : i32
    return %c0_i32, %c0_i32_0 : i32, i32
  }
  func.func @transform_4(%arg0: i32) -> (i32, i32) {
    %c0_i32 = arith.constant 0 : i32
    %c0_i32_0 = arith.constant 0 : i32
    %c0_i32_1 = arith.constant 0 : i32
    return %c0_i32, %c0_i32_0 : i32, i32
  }
  func.func @transform_5(%arg0: i32) -> (i32, i32) {
    %c0_i32 = arith.constant 0 : i32
    %c0_i32_0 = arith.constant 0 : i32
    return %arg0, %c0_i32 : i32, i32
  }
}

</mosaic_0001>

<bundles_post_ra>
// kernel: tpu_custom_call.1
= control target key start
LH: loop header
LB: loop body
LE: loop exit
PB: predicated region body
PF: predicated region fallthrough
CT: control target
= control target key end

     0   :  { %10 = vsyncpa [#allocation3], 0  ;;  %s443_s0 = inlined_call_operand.hbm [shape: f32[8,16], index: 0, kind: input, shape index: {}]   ;;  %s444_s1 = inlined_call_operand.hbm [shape: f32[16,32], index: 1, kind: input, shape index: {}]   ;;  %s445_s2 = inlined_call_operand.vmem [shape: f32[1,32], index: 2, kind: input, shape index: {}]   ;;  %s446_s3 = inlined_call_operand.hbm [shape: f32[32,128], index: 3, kind: input, shape index: {}]   ;;  %s447_s4 = inlined_call_operand.vmem [shape: f32[1,128], index: 4, kind: input, shape index: {}]   ;;  %s448_s5 = inlined_call_operand.vmem [shape: f32[8,4], index: 5, kind: output, shape index: {}]  }
   0x1   :  { %11 = vsyncpa [#allocation5], 0  ;;  %s354_s18 = smov [#allocation4]   ;;  %s284_s22 = scalar_lea.hbm %s444_s1, 256 }
   0x2   :  { %s27_s19 = sshll.u32 %s354_s18, 4  ;;  %p285_p0 = scmp.ne.s32.totalorder %s444_s1, %s284_s22  ;;  %s28_s19 = int_to_ptr.vmem [resolvable:$true] %s27_s19 }
   0x3   :  { %p288_p1 = scmp.lt.u32.totalorder %s284_s22, %s444_s1 }
   0x5   :  { %p290_p2 = pnand %p288_p1, %p285_p0 }
   0x7   :  { %293 = shalt.err (!%p290_p2)
}
   0x8   :  { %s294_s27 = scalar_lea.vmem %s28_s19, 256  ;;  %p299_p4 = scmp.lt.s32.totalorder %s28_s19, %s28_s19 }
   0x9   :  { %p295_p3 = scmp.ne.s32.totalorder %s28_s19, %s294_s27  ;;  %p300_p5 = scmp.lt.s32.totalorder %s294_s27, %s294_s27 }
   0xb   :  { %p301_p6 = por %p300_p5, %p299_p4 }
   0xd   :  { %p302_p7 = pnand %p301_p6, %p295_p3 }
   0xf   :  { %305 = shalt.err (!%p302_p7)
}
  0x10   :  { %s355_s28 = smov 128   ;;  %s356_s29 = smov 8  }
  0x11   :  { %33 = dma.hbm_to_vmem [thread:$0]  %s444_s1, 256, %s28_s19, [#allocation5], %s355_s28, %s355_s28, %s356_s29  }
  0x12   :  { %s357_s7 = smov [#allocation2]   ;;  %s358_s9 = smov [#allocation6]  }
  0x13   :  { %s18_s8 = sshll.u32 %s357_s7, 4  ;;  %s41_s10 = sshll.u32 %s358_s9, 4  ;;  %s19_s8 = int_to_ptr.vmem [resolvable:$true] %s18_s8  ;;  %s42_s10 = int_to_ptr.vmem [resolvable:$true] %s41_s10 }
  0x14   :  { %s306_s13 = scalar_lea.hbm %s443_s0, 128 }
  0x15   :  { %p307_p8 = scmp.ne.s32.totalorder %s443_s0, %s306_s13  ;;  %p310_p9 = scmp.lt.u32.totalorder %s306_s13, %s443_s0 }
  0x17   :  { %p312_p10 = pnand %p310_p9, %p307_p8 }
  0x19   :  { %315 = shalt.err (!%p312_p10)
}
  0x1a   :  { %s316_s1 = scalar_lea.vmem %s19_s8, 128  ;;  %p321_p12 = scmp.lt.s32.totalorder %s19_s8, %s19_s8 }
  0x1b   :  { %p317_p11 = scmp.ne.s32.totalorder %s19_s8, %s316_s1  ;;  %p322_p13 = scmp.lt.s32.totalorder %s316_s1, %s316_s1 }
  0x1d   :  { %p323_p0 = por %p322_p13, %p321_p12 }
  0x1f   :  { %p324_p1 = pnand %p323_p0, %p317_p11 }
  0x21   :  { %327 = shalt.err (!%p324_p1)
}
  0x22   :  { %21 = dma.hbm_to_vmem [thread:$0]  %s443_s0, 128, %s19_s8, [#allocation3]  }
  0x23   :  { %s328_s22 = scalar_lea.hbm %s446_s3, 512 }
  0x24   :  { %p329_p2 = scmp.ne.s32.totalorder %s446_s3, %s328_s22  ;;  %p332_p3 = scmp.lt.u32.totalorder %s328_s22, %s446_s3 }
  0x26   :  { %p334_p4 = pnand %p332_p3, %p329_p2 }
  0x28   :  { %337 = shalt.err (!%p334_p4)
}
  0x29   :  { %s338_s27 = scalar_lea.vmem %s42_s10, 512  ;;  %p343_p6 = scmp.lt.s32.totalorder %s42_s10, %s42_s10 }
  0x2a   :  { %p339_p5 = scmp.ne.s32.totalorder %s42_s10, %s338_s27  ;;  %p344_p7 = scmp.lt.s32.totalorder %s338_s27, %s338_s27 }
  0x2c   :  { %p345_p8 = por %p344_p7, %p343_p6 }
  0x2e   :  { %p346_p9 = pnand %p345_p8, %p339_p5 }
  0x30   :  { %349 = shalt.err (!%p346_p9)
}
  0x31   :  { %47 = dma.hbm_to_vmem [thread:$0]  %s446_s3, 512, %s42_s10, [#allocation5], %s355_s28, %s355_s28, %s356_s29  }
  0x32   :  { %350 = dma.done.wait [#allocation3], 128  }
  0x33   :  { %351 = vsyncadd [#allocation3], 4294967168 }
  0x34   :  { %352 = dma.done.wait [#allocation5], 768  }
  0x35   :  { %353 = vsyncadd [#allocation5], 4294966528  ;;  %v359_v0 = vmov 0.0|0.0   ;;  %vm360_vm0 = vmmov 0   ;;  %v361_v1 = vmov 0.0   ;;  %v60_v2 = vld [vmem:[#allocation4] sm:$0xff] }
  0x36   :  { %267 = vmatprep.subr.bf16.mxu0 %v359_v0  ;;  %253 = vmatprep.mubr.msk.f32.mxu0 %vm360_vm0, %v361_v1  ;;  %v61_v3 = vld [vmem:[#allocation4 + $0x8] sm:$0xff]  ;;  %v144_v5 = vld [vmem:[#allocation6] sm:$0xff]  ;;  %v145_v6 = vld [vmem:[#allocation6 + $0x8] sm:$0xff]  ;;  %vm69_vm1 = vcmask 130048   ;;  %vm155_vm2 = vcmask 261120   ;;  %vm229_vm3 = vcmask 31744  }
  0x37   :  { %270 = vmatprep.subr.bf16.mxu1 %v359_v0  ;;  %264 = vmatprep.mubr.msk.f32.mxu1 %vm360_vm0, %v361_v1  ;;  %v268_v4 = vpack.c.bf16 %v61_v3, %v60_v2  ;;  %v271_v7 = vpack.c.bf16 %v145_v6, %v144_v5  ;;  %v59_v8 = vld [vmem:[#allocation2] sm:$0xff]  ;;  %v146_v9 = vld [vmem:[#allocation6 + $0x10] sm:$0xff]  ;;  %v147_v10 = vld [vmem:[#allocation6 + $0x18] sm:$0xff] }
  0x38   :  { %v274_v11 = vpack.c.bf16 %v147_v10, %v146_v9  ;;  %v237_v12 = vld [vmem:[%s445_s2] ss:$0 sm:$0xff] }
  0x39   :  { %269 = vmatpush3.bf16.msra.mxu0 %v268_v4  ;;  %272 = vmatpush3.bf16.msra.mxu1 %v271_v7  ;;  %v239_v17 = vld [vmem:[%s447_s4] ss:$0 sm:$0xff] }
  0x3a   :  { %273 = vmatprep.subr.bf16.mxu1 %v359_v0 }
  0x3c   :  { %254 = vmatmul.mubr.msk.f32.vlgmr.msra.gmra.mrb[0].mxu0 %vm69_vm1, %v59_v8 }
  0x3d   :  { %275 = vmatpush3.bf16.msra.mxu1 %v274_v11 }
 0x10f   :  { %v139_v13 = vpop.f32.mrb[0].mxu0 }
 0x110   :  { %v140_v14 = vadd.f32 %v237_v12, %v139_v13  ;;  %v255_v15 = vpop.f32.mrb[1].mxu0 }
 0x112   :  { %v143_v16 = vmax.f32 %v140_v14, 0.0 }
 0x114   :  { %265 = vmatmul.mubr.msk.f32.vlgmr.msra.gmra.mrb[0].mxu1 %vm155_vm2, %v143_v16 }
 0x1e7   :  { %v225_v18 = vpop.f32.mrb[0].mxu1 }
 0x1e8   :  { %v226_v19 = vadd.f32 %v239_v17, %v225_v18  ;;  %v266_v20 = vpop.f32.mrb[1].mxu1 }
 0x1ea   :  { %230 = vst.msk [vmem:[%s448_s5] sm:$0xff] %vm229_vm3, %v226_v19 }
 0x1eb   :  { %235 = vsyncpa [#allocation3], 1 }
 0x1ec   :  { %236 = vsyncpa [#allocation5], 1 }

</bundles_post_ra>
